<compile_context>
chip_gen: v7x
topology: tpu7x:2x2x1
jax: 0.10.0
libtpu: 0.0.40
codegen_flags: <defaults>
</compile_context>

<pallas_src>
import functools
import math

import jax
import jax.numpy as jnp
from jax.experimental import pallas as pl
from jax.experimental.pallas import tpu as pltpu

NEG_INIT = -1e30      # online-softmax running-max init (f32, never fed to exp as bf16)
MASK_BIAS = -3e4      # additive no-edge bias; bf16-representable, exp() underflows to 0


def _proj_kernel(h_ref, w_ref, z_ref, s_ref, st_ref):
    """One fused matmul per row tile: z plus the (a_src.z, a_dst.z) score pair."""
    # hz = h @ [ W_func^T | W_func^T a_src | W_func^T a_dst | 0-pad ]  (f32 MXU accumulation)
    hz = jnp.dot(h_ref[...], w_ref[...], preferred_element_type=jnp.float32)
    dp = z_ref.shape[1]
    z_ref[...] = hz[:, :dp].astype(z_ref.dtype)
    s_blk = hz[:, dp:]                       # (tm, 128); col0 = a_src.z, col1 = a_dst.z
    s_ref[...] = s_blk                       # lane-dense dst-side score slab
    # pre-transposed src-side scores: (tm,128) -> (128,tm) on the idle XLU, keep 8 rows.
    st_ref[...] = jnp.transpose(s_blk)[:8, :]


def _attn_kernel(s_ref, st_ref, z_ref, hin_ref, ws_ref, bias_ref, out_ref,
                 m_sc, l_sc, acc_sc, *, exp_dtype):
    """Online-softmax attention + aggregation for one (dst tile, src tile) grid step."""
    k = pl.program_id(1)

    @pl.when(k == 0)
    def _():
        m_sc[...] = jnp.full_like(m_sc, NEG_INIT)
        l_sc[...] = jnp.zeros_like(l_sc)
        acc_sc[...] = jnp.zeros_like(acc_sc)

    s_dst = s_ref[:, 1:2]                               # (tm, 1)  a_dst . z[dst]
    s_src = st_ref[0:1, :]                              # (1, tk)  a_src . z[src]
    scores = s_dst + s_src                              # (tm, tk) f32
    e = jnp.maximum(scores, 0.01 * scores)              # leaky_relu, 2 VALU ops
    e = e + bias_ref[...]                               # additive edge mask {0, -3e4}

    m_prev = m_sc[...]
    m_new = jnp.maximum(m_prev, jnp.max(e, axis=-1, keepdims=True))
    corr = jnp.exp(m_prev - m_new)                      # (tm, 1) f32 rescale factor
    p = jnp.exp((e - m_new).astype(exp_dtype))          # bf16 EUP path on v6e/v7x
    l_sc[...] = corr * l_sc[...] + jnp.sum(p.astype(jnp.float32), axis=-1, keepdims=True)
    acc_sc[...] = corr * acc_sc[...] + jnp.dot(p, z_ref[...],
                                               preferred_element_type=jnp.float32)
    m_sc[...] = m_new

    @pl.when(k == pl.num_programs(1) - 1)
    def _():
        # denom guard only protects hypothetical zero-in-degree rows / padded rows from NaN.
        inv = pl.reciprocal(jnp.maximum(l_sc[...], 1e-30), approx=True)
        # self-projection done here: kernel 2's MXU is otherwise idle (VPU/EUP bound).
        h_s = jnp.dot(hin_ref[...].astype(ws_ref.dtype), ws_ref[...],
                      preferred_element_type=jnp.float32)
        h_new = jnp.maximum(h_s + acc_sc[...] * inv, 0.0)          # relu=True
        out_ref[...] = (hin_ref[...] + h_new).astype(out_ref.dtype)  # residual (feat_drop=0)


def _round_up(x, m):
    return ((x + m - 1) // m) * m


def my_gat_layer(h, adj, w_self, w_func, a_att, *, block_rows=256, block_src=512,
                 matmul_dtype=jnp.bfloat16):
    """h: (N, Din) f32, adj: (N, N) with adj[dst, src]!=0 iff edge, w_*: (Dout, Din),
    a_att: (1, 2*Dout).  Returns (N, Dout)."""
    n, d_in = h.shape
    d_out = w_self.shape[0]
    assert d_in == d_out, "residual connection requires in_feats == out_feats"

    f32 = jnp.float32
    use_bf16 = jnp.dtype(matmul_dtype) == jnp.dtype(jnp.bfloat16)
    exp_dtype = jnp.bfloat16 if use_bf16 else f32

    dp = _round_up(d_out, 128)                 # lane-dense feature dim

    # dst-row tile: multiple of 128 (keeps every block lane/sublane aligned and the transposed
    # score slab legal); keep >= 2 tiles when the graph allows so v7x's 2 TCs are both used.
    np128 = _round_up(n, 128)
    tm = min(max(128, _round_up(block_rows, 128)), np128)
    if np128 > 128 and np128 // tm < 2:
        tm = max(128, (np128 // 2) // 128 * 128)
    np_ = _round_up(n, tm)
    # src tile for the online softmax: multiple of 128 that divides np_.
    tk = min(_round_up(block_src, 128), np_)
    while np_ % tk:
        tk -= 128

    grid1 = (np_ // tm,)
    grid2 = (np_ // tm, np_ // tk)

    # ---- pack operands (one-time layout plumbing, outside the kernels) ----
    h_pad = jnp.zeros((np_, dp), f32).at[:n, :d_in].set(h.astype(f32))
    h_mm = h_pad.astype(matmul_dtype)

    a_vec = a_att.reshape(-1).astype(f32)
    w_func_t = w_func.T.astype(f32)                                   # (d_in, d_out)
    w_cat = jnp.zeros((dp, dp + 128), f32)
    w_cat = w_cat.at[:d_in, :d_out].set(w_func_t)                     # -> z
    w_cat = w_cat.at[:d_in, dp + 0].set(w_func_t @ a_vec[:d_out])     # -> a_src . z
    w_cat = w_cat.at[:d_in, dp + 1].set(w_func_t @ a_vec[d_out:])     # -> a_dst . z
    w_cat = w_cat.astype(matmul_dtype)

    w_self_p = jnp.zeros((dp, dp), f32).at[:d_in, :d_out].set(w_self.T.astype(f32))
    w_self_p = w_self_p.astype(matmul_dtype)

    edge = jnp.zeros((np_, np_), jnp.bool_).at[:n, :n].set(adj > 0)
    bias = jnp.where(edge, 0.0, MASK_BIAS).astype(jnp.bfloat16)       # additive mask bias

    cparams1 = pltpu.CompilerParams(dimension_semantics=("parallel",),
                                    vmem_limit_bytes=32 * 1024 * 1024)
    cparams2 = pltpu.CompilerParams(dimension_semantics=("parallel", "arbitrary"),
                                    vmem_limit_bytes=32 * 1024 * 1024)

    # ---- kernel 1: fused projection + per-node score pair (tiled over node rows) ----
    z, s_blk, s_src_t = pl.pallas_call(
        _proj_kernel,
        grid=grid1,
        in_specs=[pl.BlockSpec((tm, dp), lambda i: (i, 0)),
                  pl.BlockSpec((dp, dp + 128), lambda i: (0, 0))],
        out_specs=[pl.BlockSpec((tm, dp), lambda i: (i, 0)),
                   pl.BlockSpec((tm, 128), lambda i: (i, 0)),
                   pl.BlockSpec((8, tm), lambda i: (0, i))],
        out_shape=[jax.ShapeDtypeStruct((np_, dp), matmul_dtype),   # z (MXU dtype)
                   jax.ShapeDtypeStruct((np_, 128), f32),           # dst-side scores (lane-dense)
                   jax.ShapeDtypeStruct((8, np_), f32)],            # src-side scores, transposed
        compiler_params=cparams1,
    )(h_mm, w_cat)

    # ---- kernel 2: src-tiled online softmax + aggregation + self-proj + relu + residual ----
    out_pad = pl.pallas_call(
        functools.partial(_attn_kernel, exp_dtype=exp_dtype),
        grid=grid2,
        in_specs=[pl.BlockSpec((tm, 128), lambda i, k: (i, 0)),    # dst scores (col1 = a_dst.z)
                  pl.BlockSpec((8, tk), lambda i, k: (0, k)),      # src scores (row0 = a_src.z)
                  pl.BlockSpec((tk, dp), lambda i, k: (k, 0)),     # z src tile
                  pl.BlockSpec((tm, dp), lambda i, k: (i, 0)),     # h_in dst tile (f32)
                  pl.BlockSpec((dp, dp), lambda i, k: (0, 0)),     # W_self^T
                  pl.BlockSpec((tm, tk), lambda i, k: (i, k))],    # adjacency bias (bf16)
        out_specs=pl.BlockSpec((tm, dp), lambda i, k: (i, 0)),
        out_shape=jax.ShapeDtypeStruct((np_, dp), f32),
        scratch_shapes=[pltpu.VMEM((tm, 1), f32),     # running max
                        pltpu.VMEM((tm, 1), f32),     # running denom
                        pltpu.VMEM((tm, dp), f32)],   # running weighted sum of z
        compiler_params=cparams2,
    )(s_blk, s_src_t, z, h_pad, w_self_p, bias)

    return out_pad[:n, :d_out].astype(h.dtype)


def ref_forward(h, adj, w_self, w_func, a_att):
    """Pure-JAX f32 reference mirroring the PyTorch/DGL forward."""
    d_out = w_self.shape[0]
    h_s = h @ w_self.T
    z = h @ w_func.T
    a = a_att.reshape(-1)
    s_src = z @ a[:d_out]
    s_dst = z @ a[d_out:]
    scores = s_dst[:, None] + s_src[None, :]
    e = jnp.where(scores >= 0, scores, 0.01 * scores)
    e = jnp.where(adj > 0, e, -jnp.inf)
    alpha = jax.nn.softmax(e, axis=-1)
    alpha = jnp.where(adj > 0, alpha, 0.0)
    agg = alpha @ z
    return h + jnp.maximum(h_s + agg, 0.0)


def kaiming_normal(key, shape, nonlinearity="relu"):
    fan_in = shape[1]
    if nonlinearity == "relu":
        gain = math.sqrt(2.0)
    else:  # leaky_relu, negative_slope=0.01
        gain = math.sqrt(2.0 / (1.0 + 0.01 ** 2))
    std = gain / math.sqrt(fan_in)
    return std * jax.random.normal(key, shape, dtype=jnp.float32)


if __name__ == "__main__":
    N, D = 48, 32  # in_feats == out_feats (required by the residual connection)
    key = jax.random.PRNGKey(0)
    k_h, k_adj, k_ws, k_wf, k_att = jax.random.split(key, 5)

    h = jax.random.normal(k_h, (N, D), dtype=jnp.float32)

    # random graph with guaranteed self-loops; adj[dst, src] = 1 if edge src->dst
    adj = (jax.random.uniform(k_adj, (N, N)) < 0.3).astype(jnp.float32)
    adj = jnp.maximum(adj, jnp.eye(N, dtype=jnp.float32))

    # deterministic parameter init matching reset_parameters() shapes (att_ew=False)
    w_self = kaiming_normal(k_ws, (D, D), "relu")            # linear_self.weight
    w_func = kaiming_normal(k_wf, (D, D), "relu")            # linear_func.weight
    a_att = kaiming_normal(k_att, (1, 2 * D), "leaky_relu")  # attention_func.weight

    ref = ref_forward(h, adj, w_self, w_func, a_att)

    # f32 MXU path: only approx-reciprocal / folded-weight rounding differences vs reference
    out_f32 = jax.block_until_ready(
        my_gat_layer(h, adj, w_self, w_func, a_att, matmul_dtype=jnp.float32))
    assert jnp.allclose(out_f32, ref, rtol=1e-2, atol=1e-2), "f32 kernel mismatch vs reference"

    # bf16 MXU + bf16-exp path (v6e/v7x fast path): loose check vs the f32 reference
    # (bf16 exp argument + bf16 attention probabilities accumulate ~1e-2-level error).
    out_bf16 = jax.block_until_ready(
        my_gat_layer(h, adj, w_self, w_func, a_att, matmul_dtype=jnp.bfloat16))
    assert jnp.allclose(out_bf16, ref, rtol=2e-1, atol=2e-1), "bf16 kernel mismatch vs reference"

    print("KERNEL_OK")
</pallas_src>

<mosaic_0001>
module attributes {stable_mosaic.version = 11 : i64} {
  func.func @_proj_kernel(%arg0: i32, %arg1: memref<128x128xf32, #tpu.memory_space<vmem>>, %arg2: memref<128x256xf32, #tpu.memory_space<vmem>>, %arg3: memref<128x128xf32, #tpu.memory_space<vmem>>, %arg4: memref<128x128xf32, #tpu.memory_space<vmem>>, %arg5: memref<8x128xf32, #tpu.memory_space<vmem>>) attributes {dimension_semantics = [#tpu.dimension_semantics<parallel>], iteration_bounds = array<i64: 1>, scalar_prefetch = 0 : i64, scratch_operands = 0 : i64, tpu.core_type = #tpu.core_type<tc>, window_params = [{transform_indices = @transform_0, window_bounds = array<i64: 128, 128>}, {pipeline_mode = #tpu.pipeline_mode<synchronous>, transform_indices = @transform_1, window_bounds = array<i64: 128, 256>}, {transform_indices = @transform_2, window_bounds = array<i64: 128, 128>}, {transform_indices = @transform_3, window_bounds = array<i64: 128, 128>}, {transform_indices = @transform_4, window_bounds = array<i64: 8, 128>}]} {
    %c0 = arith.constant 0 : index
    %c0_0 = arith.constant 0 : index
    %0 = vector.load %arg1[%c0, %c0_0] : memref<128x128xf32, #tpu.memory_space<vmem>>, vector<128x128xf32>
    %c0_1 = arith.constant 0 : index
    %c0_2 = arith.constant 0 : index
    %1 = vector.load %arg2[%c0_1, %c0_2] : memref<128x256xf32, #tpu.memory_space<vmem>>, vector<128x256xf32>
    %cst = arith.constant dense<0.000000e+00> : vector<128x256xf32>
    %2 = tpu.matmul %0, %1, %cst {dimension_numbers = #tpu.dot_dimension_numbers<[1], [0], [0], [1], [0, 0, 1, 1], [], []>} : vector<128x128xf32>, vector<128x256xf32>, vector<128x256xf32> -> vector<128x256xf32>
    %3 = vector.extract_strided_slice %2 {offsets = [0, 0], sizes = [128, 128], strides = [1, 1]} : vector<128x256xf32> to vector<128x128xf32>
    %c0_3 = arith.constant 0 : index
    %c0_4 = arith.constant 0 : index
    %4 = vector.load %arg3[%c0_3, %c0_4] : memref<128x128xf32, #tpu.memory_space<vmem>>, vector<128x128xf32>
    tpu.vector_store %arg3[%c0_3, %c0_4], %3 {strides = array<i32>} : memref<128x128xf32, #tpu.memory_space<vmem>>, vector<128x128xf32>,
    %5 = vector.extract_strided_slice %2 {offsets = [0, 128], sizes = [128, 128], strides = [1, 1]} : vector<128x256xf32> to vector<128x128xf32>
    %c0_5 = arith.constant 0 : index
    %c0_6 = arith.constant 0 : index
    %6 = vector.load %arg4[%c0_5, %c0_6] : memref<128x128xf32, #tpu.memory_space<vmem>>, vector<128x128xf32>
    tpu.vector_store %arg4[%c0_5, %c0_6], %5 {strides = array<i32>} : memref<128x128xf32, #tpu.memory_space<vmem>>, vector<128x128xf32>,
    %7 = tpu.transpose %5, [1, 0] : vector<128x128xf32> -> vector<128x128xf32>
    %8 = vector.extract_strided_slice %7 {offsets = [0, 0], sizes = [8, 128], strides = [1, 1]} : vector<128x128xf32> to vector<8x128xf32>
    %c0_7 = arith.constant 0 : index
    %c0_8 = arith.constant 0 : index
    %9 = vector.load %arg5[%c0_7, %c0_8] : memref<8x128xf32, #tpu.memory_space<vmem>>, vector<8x128xf32>
    tpu.vector_store %arg5[%c0_7, %c0_8], %8 {strides = array<i32>} : memref<8x128xf32, #tpu.memory_space<vmem>>, vector<8x128xf32>,
    return
  }
  func.func @transform_0(%arg0: i32) -> (i32, i32) {
    %c0_i32 = arith.constant 0 : i32
    %c0_i32_0 = arith.constant 0 : i32
    return %arg0, %c0_i32 : i32, i32
  }
  func.func @transform_1(%arg0: i32) -> (i32, i32) {
    %c0_i32 = arith.constant 0 : i32
    %c0_i32_0 = arith.constant 0 : i32
    %c0_i32_1 = arith.constant 0 : i32
    return %c0_i32, %c0_i32_0 : i32, i32
  }
  func.func @transform_2(%arg0: i32) -> (i32, i32) {
    %c0_i32 = arith.constant 0 : i32
    %c0_i32_0 = arith.constant 0 : i32
    return %arg0, %c0_i32 : i32, i32
  }
  func.func @transform_3(%arg0: i32) -> (i32, i32) {
    %c0_i32 = arith.constant 0 : i32
    %c0_i32_0 = arith.constant 0 : i32
    return %arg0, %c0_i32 : i32, i32
  }
  func.func @transform_4(%arg0: i32) -> (i32, i32) {
    %c0_i32 = arith.constant 0 : i32
    %c0_i32_0 = arith.constant 0 : i32
    return %c0_i32, %arg0 : i32, i32
  }
}

</mosaic_0001>

<bundles_post_ra>
// kernel: tpu_custom_call.1
= control target key start
LH: loop header
LB: loop body
LE: loop exit
PB: predicated region body
PF: predicated region fallthrough
CT: control target
= control target key end

     0   :  { %10 = vsyncpa [#allocation3], 0  ;;  %s688_s0 = inlined_call_operand.hbm [shape: f32[128,128], index: 0, kind: input, shape index: {}]   ;;  %s689_s1 = inlined_call_operand.hbm [shape: f32[128,256], index: 1, kind: input, shape index: {}]   ;;  %s690_s2 = inlined_call_operand.hbm [shape: f32[128,128], index: 2, kind: output, shape index: {0}]   ;;  %s691_s3 = inlined_call_operand.hbm [shape: f32[128,128], index: 3, kind: output, shape index: {1}]   ;;  %s692_s4 = inlined_call_operand.hbm [shape: f32[8,128], index: 4, kind: output, shape index: {2}]  }
   0x1   :  { %11 = vsyncpa [#allocation6], 0 }
   0x2   :  { %12 = vsyncpa [#allocation4], 0 }
   0x3   :  { %13 = vsyncpa [#allocation9], 0  ;;  %s541_s15 = smov [#allocation2]   ;;  %s423_s19 = scalar_lea.hbm %s688_s0, 2048 }
   0x4   :  { %s19_s16 = sshll.u32 %s541_s15, 4  ;;  %p424_p0 = scmp.ne.s32.totalorder %s688_s0, %s423_s19  ;;  %s20_s16 = int_to_ptr.vmem [resolvable:$true] %s19_s16 }
   0x5   :  { %p427_p1 = scmp.lt.u32.totalorder %s423_s19, %s688_s0 }
   0x7   :  { %p429_p2 = pnand %p427_p1, %p424_p0 }
   0x9   :  { %432 = shalt.err (!%p429_p2)
}
   0xa   :  { %s433_s24 = scalar_lea.vmem %s20_s16, 2048  ;;  %p438_p4 = scmp.lt.s32.totalorder %s20_s16, %s20_s16 }
   0xb   :  { %p434_p3 = scmp.ne.s32.totalorder %s20_s16, %s433_s24  ;;  %p439_p5 = scmp.lt.s32.totalorder %s433_s24, %s433_s24 }
   0xd   :  { %p440_p6 = por %p439_p5, %p438_p4 }
   0xf   :  { %p441_p7 = pnand %p440_p6, %p434_p3 }
  0x11   :  { %444 = shalt.err (!%p441_p7)
}
  0x12   :  { %s542_s25 = smov 128   ;;  %s543_s26 = smov 8  }
  0x13   :  { %25 = dma.hbm_to_vmem [thread:$0]  %s688_s0, 2048, %s20_s16, [#allocation3], %s542_s25, %s542_s25, %s543_s26  }
  0x14   :  { %s544_s29 = smov [#allocation5]   ;;  %s445_s7 = scalar_lea.hbm %s689_s1, 4096 }
  0x15   :  { %s31_s30 = sshll.u32 %s544_s29, 4  ;;  %p446_p8 = scmp.ne.s32.totalorder %s689_s1, %s445_s7  ;;  %s32_s30 = int_to_ptr.vmem [resolvable:$true] %s31_s30 }
  0x16   :  { %p449_p9 = scmp.lt.u32.totalorder %s445_s7, %s689_s1 }
  0x18   :  { %p451_p10 = pnand %p449_p9, %p446_p8 }
  0x1a   :  { %454 = shalt.err (!%p451_p10)
}
  0x1b   :  { %s455_s12 = scalar_lea.vmem %s32_s30, 4096  ;;  %p460_p12 = scmp.lt.s32.totalorder %s32_s30, %s32_s30 }
  0x1c   :  { %p456_p11 = scmp.ne.s32.totalorder %s32_s30, %s455_s12  ;;  %p461_p13 = scmp.lt.s32.totalorder %s455_s12, %s455_s12 }
  0x1e   :  { %p462_p0 = por %p461_p13, %p460_p12 }
  0x20   :  { %p463_p1 = pnand %p462_p0, %p456_p11 }
  0x22   :  { %466 = shalt.err (!%p463_p1)
}
  0x23   :  { %s545_s0 = smov 256   ;;  %s546_s13 = smov 16  }
  0x24   :  { %37 = dma.hbm_to_vmem [thread:$0]  %s689_s1, 4096, %s32_s30, [#allocation6], %s545_s0, %s545_s0, %s546_s13  }
  0x25   :  { %533 = dma.done.wait [#allocation3], 2048  }
  0x26   :  { %534 = vsyncadd [#allocation3], 4294965248 }
  0x27   :  { %535 = dma.done.wait [#allocation6], 4096  }
  0x28   :  { %536 = vsyncadd [#allocation6], 4294963200  ;;  %v547_v0 = vmov 0.0   ;;  %v61_v1 = vld [vmem:[#allocation5 + $0x8] sm:$0xff]  ;;  %v63_v2 = vld [vmem:[#allocation5 + $0x18] sm:$0xff]  ;;  %s548_s1 = smov [#allocation7]  }
  0x29   :  { %156 = vmatprep.mubr.f32.mxu0 %v547_v0  ;;  %204 = vmatprep.mubr.f32.mxu1 %v547_v0  ;;  %v60_v3 = vld [vmem:[#allocation5] sm:$0xff]  ;;  %v365_v4 = vpack.c.bf16 %v63_v2, %v61_v1  ;;  %v62_v5 = vld [vmem:[#allocation5 + $0x10] sm:$0xff]  ;;  %v65_v6 = vld [vmem:[#allocation5 + $0x28] sm:$0xff]  ;;  %s323_s16 = sshll.u32 %s548_s1, 4  ;;  %s549_s17 = smov [#allocation8]   ;;  %s324_s16 = int_to_ptr.vmem [resolvable:$true] %s323_s16 }
  0x2a   :  { %v67_v7 = vld [vmem:[#allocation5 + $0x38] sm:$0xff]  ;;  %v367_v8 = vpack.c.bf16 %v62_v5, %v60_v3  ;;  %v64_v10 = vld [vmem:[#allocation5 + $0x20] sm:$0xff]  ;;  %v66_v11 = vld [vmem:[#allocation5 + $0x30] sm:$0xff]  ;;  %s335_s18 = sshll.u32 %s549_s17, 4  ;;  %s467_s19 = scalar_lea.vmem %s324_s16, 2048  ;;  %s634_s18 = int_to_ptr.vmem [resolvable:$true] %s335_s18 }
  0x2b   :  { %v369_v9 = vpack.c.bf16 %v67_v7, %v65_v6  ;;  %v69_v12 = vld [vmem:[#allocation5 + $0x48] sm:$0xff]  ;;  %366 = vmatprep.subr.bf16.mxu0 %v365_v4  ;;  %v71_v13 = vld [vmem:[#allocation5 + $0x58] sm:$0xff]  ;;  %397 = vmatprep.subr.bf16.mxu1 %v365_v4  ;;  %v371_v14 = vpack.c.bf16 %v66_v11, %v64_v10  ;;  %v68_v16 = vld [vmem:[#allocation5 + $0x40] sm:$0xff]  ;;  %p468_p2 = scmp.ne.s32.totalorder %s324_s16, %s467_s19  ;;  %p472_p3 = scmp.lt.s32.totalorder %s324_s16, %s324_s16 }
  0x2c   :  { %368 = vmatpush1.bf16.msra.mxu0 %v367_v8  ;;  %405 = vmatpush1.bf16.msra.mxu1 %v367_v8  ;;  %v373_v15 = vpack.c.bf16 %v71_v13, %v69_v12  ;;  %v70_v17 = vld [vmem:[#allocation5 + $0x50] sm:$0xff]  ;;  %v73_v18 = vld [vmem:[#allocation5 + $0x68] sm:$0xff]  ;;  %v75_v19 = vld [vmem:[#allocation5 + $0x78] sm:$0xff]  ;;  %p473_p4 = scmp.lt.s32.totalorder %s467_s19, %s467_s19 }
  0x2d   :  { %370 = vmatprep.subr.bf16.mxu0 %v369_v9  ;;  %398 = vmatprep.subr.bf16.mxu1 %v369_v9  ;;  %v375_v20 = vpack.c.bf16 %v70_v17, %v68_v16  ;;  %v377_v21 = vpack.c.bf16 %v75_v19, %v73_v18  ;;  %v72_v22 = vld [vmem:[#allocation5 + $0x60] sm:$0xff]  ;;  %v74_v23 = vld [vmem:[#allocation5 + $0x70] sm:$0xff]  ;;  %v77_v24 = vld [vmem:[#allocation5 + $0x88] sm:$0xff] }
  0x2e   :  { %v79_v25 = vld [vmem:[#allocation5 + $0x98] sm:$0xff]  ;;  %v379_v26 = vpack.c.bf16 %v74_v23, %v72_v22  ;;  %v76_v28 = vld [vmem:[#allocation5 + $0x80] sm:$0xff]  ;;  %v78_v29 = vld [vmem:[#allocation5 + $0x90] sm:$0xff]  ;;  %p474_p5 = por %p473_p4, %p472_p3 }
  0x2f   :  { %v381_v27 = vpack.c.bf16 %v79_v25, %v77_v24  ;;  %v81_v30 = vld [vmem:[#allocation5 + $0xa8] sm:$0xff]  ;;  %v83_v31 = vld [vmem:[#allocation5 + $0xb8] sm:$0xff]  ;;  %v383_v32 = vpack.c.bf16 %v78_v29, %v76_v28  ;;  %v80_v34 = vld [vmem:[#allocation5 + $0xa0] sm:$0xff] }
  0x30   :  { %372 = vmatpush1.bf16.msra.mxu0 %v371_v14  ;;  %406 = vmatpush1.bf16.msra.mxu1 %v371_v14  ;;  %v385_v33 = vpack.c.bf16 %v83_v31, %v81_v30  ;;  %v82_v35 = vld [vmem:[#allocation5 + $0xb0] sm:$0xff]  ;;  %v85_v36 = vld [vmem:[#allocation5 + $0xc8] sm:$0xff]  ;;  %v87_v37 = vld [vmem:[#allocation5 + $0xd8] sm:$0xff]  ;;  %p475_p6 = pnand %p474_p5, %p468_p2 }
  0x31   :  { %374 = vmatprep.subr.bf16.mxu0 %v373_v15  ;;  %399 = vmatprep.subr.bf16.mxu1 %v373_v15  ;;  %v387_v38 = vpack.c.bf16 %v82_v35, %v80_v34  ;;  %v389_v39 = vpack.c.bf16 %v87_v37, %v85_v36  ;;  %v84_v40 = vld [vmem:[#allocation5 + $0xc0] sm:$0xff]  ;;  %v86_v41 = vld [vmem:[#allocation5 + $0xd0] sm:$0xff]  ;;  %v89_v42 = vld [vmem:[#allocation5 + $0xe8] sm:$0xff] }
  0x32   :  { %v91_v43 = vld [vmem:[#allocation5 + $0xf8] sm:$0xff]  ;;  %v391_v44 = vpack.c.bf16 %v86_v41, %v84_v40  ;;  %v88_v46 = vld [vmem:[#allocation5 + $0xe0] sm:$0xff]  ;;  %v90_v47 = vld [vmem:[#allocation5 + $0xf0] sm:$0xff] }
  0x33   :  { %v393_v45 = vpack.c.bf16 %v91_v43, %v89_v42  ;;  %v395_v48 = vpack.c.bf16 %v90_v47, %v88_v46  ;;  %v44_v49 = vld [vmem:[#allocation2] sm:$0xff]  ;;  %v45_v51 = vld [vmem:[#allocation2 + $0x8] sm:$0xff]  ;;  %v46_v53 = vld [vmem:[#allocation2 + $0x10] sm:$0xff] }
  0x34   :  { %376 = vmatpush1.bf16.msra.mxu0 %v375_v20  ;;  %407 = vmatpush1.bf16.msra.mxu1 %v375_v20  ;;  %v52_v50 = vld [vmem:[#allocation2 + $0x40] sm:$0xff]  ;;  %v53_v52 = vld [vmem:[#allocation2 + $0x48] sm:$0xff]  ;;  %v54_v54 = vld [vmem:[#allocation2 + $0x50] sm:$0xff] }
  0x35   :  { %378 = vmatprep.subr.bf16.mxu0 %v377_v21  ;;  %400 = vmatprep.subr.bf16.mxu1 %v377_v21  ;;  %v47_v55 = vld [vmem:[#allocation2 + $0x18] sm:$0xff]  ;;  %v48_v57 = vld [vmem:[#allocation2 + $0x20] sm:$0xff]  ;;  %v49_v59 = vld [vmem:[#allocation2 + $0x28] sm:$0xff] }
  0x36   :  { %v55_v56 = vld [vmem:[#allocation2 + $0x58] sm:$0xff]  ;;  %v56_v58 = vld [vmem:[#allocation2 + $0x60] sm:$0xff]  ;;  %v57_v60 = vld [vmem:[#allocation2 + $0x68] sm:$0xff] }
  0x37   :  { %v50_v61 = vld [vmem:[#allocation2 + $0x30] sm:$0xff]  ;;  %v51_v63 = vld [vmem:[#allocation2 + $0x38] sm:$0xff] }
  0x38   :  { %380 = vmatpush1.bf16.msra.mxu0 %v379_v26  ;;  %408 = vmatpush1.bf16.msra.mxu1 %v379_v26  ;;  %v58_v62 = vld [vmem:[#allocation2 + $0x70] sm:$0xff]  ;;  %v59_v1 = vld [vmem:[#allocation2 + $0x78] sm:$0xff] }
  0x39   :  { %382 = vmatprep.subr.bf16.mxu0 %v381_v27  ;;  %401 = vmatprep.subr.bf16.mxu1 %v381_v27 }
  0x3c   :  { %384 = vmatpush1.bf16.msra.mxu0 %v383_v32  ;;  %409 = vmatpush1.bf16.msra.mxu1 %v383_v32 }
  0x3d   :  { %386 = vmatprep.subr.bf16.mxu0 %v385_v33  ;;  %402 = vmatprep.subr.bf16.mxu1 %v385_v33 }
  0x40   :  { %388 = vmatpush1.bf16.msra.mxu0 %v387_v38  ;;  %410 = vmatpush1.bf16.msra.mxu1 %v387_v38 }
  0x41   :  { %390 = vmatprep.subr.bf16.mxu0 %v389_v39  ;;  %403 = vmatprep.subr.bf16.mxu1 %v389_v39 }
  0x44   :  { %392 = vmatpush1.bf16.msra.mxu0 %v391_v44  ;;  %411 = vmatpush1.bf16.msra.mxu1 %v391_v44 }
  0x45   :  { %394 = vmatprep.subr.bf16.mxu0 %v393_v45  ;;  %404 = vmatprep.subr.bf16.mxu1 %v393_v45 }
  0x48   :  { %396 = vmatpush1.bf16.msra.mxu0 %v395_v48  ;;  %412 = vmatpush1.bf16.msra.mxu1 %v395_v48 }
  0x4b   :  { %157 = vmatmul.mubr.f32.vlgmr.msra.gmra.mrb[0].mxu0 %v44_v49  ;;  %205 = vmatmul.mubr.f32.vlgmr.msra.gmra.mrb[0].mxu1 %v52_v50 }
  0x4c   :  { %162 = vmatprep.mubr.f32.mxu0 %v547_v0  ;;  %210 = vmatprep.mubr.f32.mxu1 %v547_v0 }
  0x4f   :  { %163 = vmatmul.mubr.f32.gmra.mrb[2].mxu0 %v45_v51  ;;  %211 = vmatmul.mubr.f32.gmra.mrb[2].mxu1 %v53_v52 }
  0x50   :  { %168 = vmatprep.mubr.f32.mxu0 %v547_v0  ;;  %216 = vmatprep.mubr.f32.mxu1 %v547_v0 }
  0x53   :  { %169 = vmatmul.mubr.f32.gmra.mrb[4].mxu0 %v46_v53  ;;  %217 = vmatmul.mubr.f32.gmra.mrb[4].mxu1 %v54_v54 }
  0x54   :  { %174 = vmatprep.mubr.f32.mxu0 %v547_v0  ;;  %222 = vmatprep.mubr.f32.mxu1 %v547_v0 }
  0x57   :  { %175 = vmatmul.mubr.f32.gmra.mrb[6].mxu0 %v47_v55  ;;  %223 = vmatmul.mubr.f32.gmra.mrb[6].mxu1 %v55_v56 }
  0x58   :  { %180 = vmatprep.mubr.f32.mxu0 %v547_v0  ;;  %228 = vmatprep.mubr.f32.mxu1 %v547_v0 }
  0x5b   :  { %181 = vmatmul.mubr.f32.gmra.mrb[8].mxu0 %v48_v57  ;;  %229 = vmatmul.mubr.f32.gmra.mrb[8].mxu1 %v56_v58 }
  0x5c   :  { %186 = vmatprep.mubr.f32.mxu0 %v547_v0  ;;  %234 = vmatprep.mubr.f32.mxu1 %v547_v0 }
  0x5f   :  { %187 = vmatmul.mubr.f32.gmra.mrb[10].mxu0 %v49_v59  ;;  %235 = vmatmul.mubr.f32.gmra.mrb[10].mxu1 %v57_v60 }
  0x60   :  { %192 = vmatprep.mubr.f32.mxu0 %v547_v0  ;;  %240 = vmatprep.mubr.f32.mxu1 %v547_v0 }
  0x63   :  { %193 = vmatmul.mubr.f32.gmra.mrb[12].mxu0 %v50_v61  ;;  %241 = vmatmul.mubr.f32.gmra.mrb[12].mxu1 %v58_v62 }
  0x64   :  { %198 = vmatprep.mubr.f32.mxu0 %v547_v0  ;;  %246 = vmatprep.mubr.f32.mxu1 %v547_v0 }
  0x67   :  { %199 = vmatmul.mubr.f32.gmra.mrb[14].mxu0 %v51_v63  ;;  %247 = vmatmul.mubr.f32.gmra.mrb[14].mxu1 %v59_v1 }
 0x11e   :  { %v158_v2 = vpop.f32.mrb[0].mxu0  ;;  %v206_v3 = vpop.f32.mrb[0].mxu1 }
 0x11f   :  { %253 = vst [vmem:[#allocation7] sm:$0xff] %v158_v2  ;;  %v160_v4 = vpop.f32.mrb[1].mxu0  ;;  %261 = vst [vmem:[#allocation7 + $0x40] sm:$0xff] %v206_v3  ;;  %v619_v5 = vpop.f32.mrb[1].mxu1 }
 0x120   :  { %269 = vst [vmem:[#allocation8] sm:$0xff] %v160_v4  ;;  %285 = vxpose.xlu0.b32.start [1/16] (narrow) %v160_v4, 8  ;;  %277 = vst [vmem:[#allocation8 + $0x40] sm:$0xff] %v619_v5 }
 0x122   :  { %v164_v6 = vpop.f32.mrb[2].mxu0  ;;  %v212_v7 = vpop.f32.mrb[2].mxu1 }
 0x123   :  { %254 = vst [vmem:[#allocation7 + $0x8] sm:$0xff] %v164_v6  ;;  %v166_v8 = vpop.f32.mrb[3].mxu0  ;;  %262 = vst [vmem:[#allocation7 + $0x48] sm:$0xff] %v212_v7  ;;  %v622_v0 = vpop.f32.mrb[3].mxu1 }
 0x124   :  { %270 = vst [vmem:[#allocation8 + $0x8] sm:$0xff] %v166_v8  ;;  %286 = vxpose.xlu0.b32.cont [2/16] (narrow) %v166_v8, 8  ;;  %278 = vst [vmem:[#allocation8 + $0x48] sm:$0xff] %v622_v0 }
 0x126   :  { %v170_v9 = vpop.f32.mrb[4].mxu0  ;;  %v218_v10 = vpop.f32.mrb[4].mxu1 }
 0x127   :  { %255 = vst [vmem:[#allocation7 + $0x10] sm:$0xff] %v170_v9  ;;  %v172_v11 = vpop.f32.mrb[5].mxu0  ;;  %263 = vst [vmem:[#allocation7 + $0x50] sm:$0xff] %v218_v10  ;;  %v625_v12 = vpop.f32.mrb[5].mxu1 }
 0x128   :  { %271 = vst [vmem:[#allocation8 + $0x10] sm:$0xff] %v172_v11  ;;  %287 = vxpose.xlu0.b32.cont [3/16] (narrow) %v172_v11, 8  ;;  %279 = vst [vmem:[#allocation8 + $0x50] sm:$0xff] %v625_v12 }
 0x12a   :  { %v176_v13 = vpop.f32.mrb[6].mxu0  ;;  %v224_v14 = vpop.f32.mrb[6].mxu1 }
 0x12b   :  { %256 = vst [vmem:[#allocation7 + $0x18] sm:$0xff] %v176_v13  ;;  %v178_v15 = vpop.f32.mrb[7].mxu0  ;;  %264 = vst [vmem:[#allocation7 + $0x58] sm:$0xff] %v224_v14  ;;  %v628_v16 = vpop.f32.mrb[7].mxu1 }
 0x12c   :  { %272 = vst [vmem:[#allocation8 + $0x18] sm:$0xff] %v178_v15  ;;  %288 = vxpose.xlu0.b32.cont [4/16] (narrow) %v178_v15, 8  ;;  %280 = vst [vmem:[#allocation8 + $0x58] sm:$0xff] %v628_v16 }
 0x12e   :  { %v182_v17 = vpop.f32.mrb[8].mxu0  ;;  %v230_v18 = vpop.f32.mrb[8].mxu1 }
 0x12f   :  { %257 = vst [vmem:[#allocation7 + $0x20] sm:$0xff] %v182_v17  ;;  %v184_v19 = vpop.f32.mrb[9].mxu0  ;;  %265 = vst [vmem:[#allocation7 + $0x60] sm:$0xff] %v230_v18  ;;  %v631_v20 = vpop.f32.mrb[9].mxu1 }
 0x130   :  { %273 = vst [vmem:[#allocation8 + $0x20] sm:$0xff] %v184_v19  ;;  %289 = vxpose.xlu0.b32.cont [5/16] (narrow) %v184_v19, 8  ;;  %281 = vst [vmem:[#allocation8 + $0x60] sm:$0xff] %v631_v20 }
 0x132   :  { %v188_v21 = vpop.f32.mrb[10].mxu0  ;;  %v236_v22 = vpop.f32.mrb[10].mxu1 }
 0x133   :  { %258 = vst [vmem:[#allocation7 + $0x28] sm:$0xff] %v188_v21  ;;  %v190_v23 = vpop.f32.mrb[11].mxu0  ;;  %266 = vst [vmem:[#allocation7 + $0x68] sm:$0xff] %v236_v22  ;;  %v238_v24 = vpop.f32.mrb[11].mxu1 }
 0x134   :  { %274 = vst [vmem:[#allocation8 + $0x28] sm:$0xff] %v190_v23  ;;  %290 = vxpose.xlu0.b32.cont [6/16] (narrow) %v190_v23, 8  ;;  %282 = vst [vmem:[#allocation8 + $0x68] sm:$0xff] %v238_v24 }
 0x136   :  { %v194_v25 = vpop.f32.mrb[12].mxu0  ;;  %v242_v26 = vpop.f32.mrb[12].mxu1 }
 0x137   :  { %259 = vst [vmem:[#allocation7 + $0x30] sm:$0xff] %v194_v25  ;;  %v196_v27 = vpop.f32.mrb[13].mxu0  ;;  %267 = vst [vmem:[#allocation7 + $0x70] sm:$0xff] %v242_v26  ;;  %v244_v28 = vpop.f32.mrb[13].mxu1 }
 0x138   :  { %275 = vst [vmem:[#allocation8 + $0x30] sm:$0xff] %v196_v27  ;;  %291 = vxpose.xlu0.b32.cont [7/16] (narrow) %v196_v27, 8  ;;  %283 = vst [vmem:[#allocation8 + $0x70] sm:$0xff] %v244_v28 }
 0x13a   :  { %v200_v29 = vpop.f32.mrb[14].mxu0  ;;  %v248_v30 = vpop.f32.mrb[14].mxu1 }
 0x13b   :  { %260 = vst [vmem:[#allocation7 + $0x38] sm:$0xff] %v200_v29  ;;  %v202_v31 = vpop.f32.mrb[15].mxu0  ;;  %268 = vst [vmem:[#allocation7 + $0x78] sm:$0xff] %v248_v30  ;;  %v250_v32 = vpop.f32.mrb[15].mxu1 }
 0x13c   :  { %276 = vst [vmem:[#allocation8 + $0x38] sm:$0xff] %v202_v31  ;;  %292 = vxpose.xlu0.b32.cont [8/16] (narrow) %v202_v31, 8  ;;  %284 = vst [vmem:[#allocation8 + $0x78] sm:$0xff] %v250_v32 }
 0x13d   :  { %478 = shalt.err (!%p475_p6)
}
 0x13e   :  { %s479_s22 = scalar_lea.hbm %s690_s2, 2048 }
 0x13f   :  { %p480_p7 = scmp.ne.s32.totalorder %s690_s2, %s479_s22  ;;  %p483_p8 = scmp.lt.u32.totalorder %s479_s22, %s690_s2 }
 0x141   :  { %p485_p9 = pnand %p483_p8, %p480_p7 }
 0x143   :  { %488 = shalt.err (!%p485_p9)
}
 0x144   :  { %329 = dma.vmem_to_hbm [thread:$0]  %s324_s16, 2048, %s690_s2, [#allocation4], %s542_s25, %s542_s25, %s543_s26  }
 0x145   :  { %s489_s5 = scalar_lea.vmem %s634_s18, 2048  ;;  %p494_p11 = scmp.lt.s32.totalorder %s634_s18, %s634_s18 }
 0x146   :  { %p490_p10 = scmp.ne.s32.totalorder %s634_s18, %s489_s5  ;;  %p495_p12 = scmp.lt.s32.totalorder %s489_s5, %s489_s5 }
 0x148   :  { %p496_p13 = por %p495_p12, %p494_p11 }
 0x14a   :  { %p497_p0 = pnand %p496_p13, %p490_p10 }
 0x14c   :  { %500 = shalt.err (!%p497_p0)
}
 0x14d   :  { %s501_s8 = scalar_lea.hbm %s691_s3, 2048 }
 0x14e   :  { %p502_p1 = scmp.ne.s32.totalorder %s691_s3, %s501_s8  ;;  %p505_p2 = scmp.lt.u32.totalorder %s501_s8, %s691_s3 }
 0x150   :  { %p507_p3 = pnand %p505_p2, %p502_p1 }
 0x152   :  { %510 = shalt.err (!%p507_p3)
}
 0x153   :  { %341 = dma.vmem_to_hbm [thread:$0]  %s634_s18, 2048, %s691_s3, [#allocation9], %s542_s25, %s542_s25, %s543_s26   ;;  %293 = vxpose.xlu0.b32.cont [9/16] (narrow) %v619_v5, 8 }
 0x154   :  { %s550_s13 = smov [#allocation10]  }
 0x155   :  { %s348_s14 = sshll.u32 %s550_s13, 4  ;;  %s349_s14 = int_to_ptr.vmem [resolvable:$true] %s348_s14 }
 0x156   :  { %s511_s15 = scalar_lea.vmem %s349_s14, 128  ;;  %p516_p5 = scmp.lt.s32.totalorder %s349_s14, %s349_s14 }
 0x157   :  { %294 = vxpose.xlu0.b32.cont [10/16] (narrow) %v622_v0, 8  ;;  %p512_p4 = scmp.ne.s32.totalorder %s349_s14, %s511_s15  ;;  %p517_p6 = scmp.lt.s32.totalorder %s511_s15, %s511_s15 }
 0x159   :  { %p518_p7 = por %p517_p6, %p516_p5 }
 0x15b   :  { %295 = vxpose.xlu0.b32.cont [11/16] (narrow) %v625_v12, 8  ;;  %p519_p8 = pnand %p518_p7, %p512_p4 }
 0x15f   :  { %296 = vxpose.xlu0.b32.cont [12/16] (narrow) %v628_v16, 8 }
 0x163   :  { %297 = vxpose.xlu0.b32.cont [13/16] (narrow) %v631_v20, 8 }
 0x167   :  { %298 = vxpose.xlu0.b32.cont [14/16] (narrow) %v238_v24, 8 }
 0x16b   :  { %299 = vxpose.xlu0.b32.cont [15/16] (narrow) %v244_v28, 8 }
 0x16f   :  { %300 = vxpose.xlu0.b32.end [16/16] (narrow) %v250_v32, 8 }
 0x1b3   :  { %v301_v33 = vpop.trf.xlu0 }
 0x1b4   :  { %317 = vst [vmem:[#allocation10] sm:$0xff] %v301_v33 }
 0x1b5   :  { %522 = shalt.err (!%p519_p8)
}
 0x1b6   :  { %s523_s26 = scalar_lea.hbm %s692_s4, 128 }
 0x1b7   :  { %p524_p9 = scmp.ne.s32.totalorder %s692_s4, %s523_s26  ;;  %p527_p10 = scmp.lt.u32.totalorder %s523_s26, %s692_s4 }
 0x1b9   :  { %p529_p11 = pnand %p527_p10, %p524_p9 }
 0x1bb   :  { %532 = shalt.err (!%p529_p11)
}
 0x1bc   :  { %351 = dma.vmem_to_hbm [thread:$0]  %s349_s14, 128, %s692_s4, [#allocation9]  }
 0x1bd   :  { %537 = dma.done.wait [#allocation4], 2048  }
 0x1be   :  { %538 = vsyncadd [#allocation4], 4294965248 }
 0x1bf   :  { %539 = dma.done.wait [#allocation9], 2176  }
 0x1c0   :  { %540 = vsyncadd [#allocation9], 4294965120 }
 0x1c1   :  { %361 = vsyncpa [#allocation3], 1 }
 0x1c2   :  { %362 = vsyncpa [#allocation6], 1 }
 0x1c3   :  { %363 = vsyncpa [#allocation4], 1 }
 0x1c4   :  { %364 = vsyncpa [#allocation9], 1 }

</bundles_post_ra>
